<compile_context>
chip_gen: v7x
topology: tpu7x:2x2x1
jax: 0.10.0
libtpu: 0.0.40
codegen_flags: <defaults>
</compile_context>

<pallas_src>
import functools

import jax
import jax.numpy as jnp
from jax import lax
from jax.experimental import pallas as pl
from jax.experimental.pallas import tpu as pltpu

EPS = 1e-5


def _vmem_limit_bytes():
    """Generation-aware scoped-VMEM limit (v5e/v6e: 128 MiB, v7x: 64 MiB)."""
    try:
        info = pltpu.get_tpu_info()
        cap = int(getattr(info, "vmem_capacity_bytes", 64 * 1024 * 1024))
    except Exception:
        cap = 64 * 1024 * 1024
    return max(32 * 1024 * 1024, min(cap * 5 // 8, 96 * 1024 * 1024))


def _pixel_masks(P, H, W):
    """In-kernel row/column validity masks for the 3x3 'SAME' conv taps."""
    pidx = lax.broadcasted_iota(jnp.int32, (1, P), 1)
    if W & (W - 1) == 0:                      # power-of-two W: cheap bitwise path
        col = jnp.bitwise_and(pidx, W - 1)
    else:                                     # general W fallback
        col = pidx % W
    row_m = pidx >= W                         # input row h-1 exists (dh = -1)
    row_p = pidx < (H - 1) * W                # input row h+1 exists (dh = +1)
    col_m = col >= 1                          # input col w-1 exists (dw = -1)
    col_p = col <= W - 2                      # input col w+1 exists (dw = +1)
    return row_m, row_p, col_m, col_p


def _conv3x3(x_f32, w_stack, *, H, W, Cout, n_extra=0):
    """3x3 'SAME' conv (optionally with fused extra output rows) as ONE matmul.

    x_f32:   (C, P) f32 activations, channel-major, P = H*W pixels on lanes.
    w_stack: ((3 + extra) * Cout, 3*C) bf16; the first three Cout-row slabs are
             the dw = -1 / 0 / +1 weight slabs (columns dh-major, channel-minor),
             extra rows (e.g. the fused 1x1 downsample) read only the centre
             (un-shifted) rows.
    Returns (y (Cout, P) f32, extra (n_extra, P) f32 or None).
    """
    C, P = x_f32.shape
    row_m, row_p, col_m, col_p = _pixel_masks(P, H, W)

    # 3 row-shifted copies (dh = -1, 0, +1) shared across all dw taps.
    # pltpu.roll wraps, so wrapped rows are zeroed by the row-validity masks.
    r_m = jnp.where(row_m, pltpu.roll(x_f32, W, axis=1), 0.0)        # x[p - W]
    r_p = jnp.where(row_p, pltpu.roll(x_f32, P - W, axis=1), 0.0)    # x[p + W]
    rows = jnp.concatenate([r_m, x_f32, r_p], axis=0).astype(jnp.bfloat16)

    res = jnp.dot(w_stack, rows, preferred_element_type=jnp.float32)

    s_m = res[0:Cout]                  # dw = -1 slab result
    s_0 = res[Cout:2 * Cout]           # dw =  0
    s_p = res[2 * Cout:3 * Cout]       # dw = +1
    # dw = +-1 applied post-matmul: lane roll (XLU) + column mask on (Cout, P).
    y = (s_0
         + jnp.where(col_m, pltpu.roll(s_m, 1, axis=1), 0.0)         # s_m[p - 1]
         + jnp.where(col_p, pltpu.roll(s_p, P - 1, axis=1), 0.0))    # s_p[p + 1]
    extra = res[3 * Cout:3 * Cout + n_extra] if n_extra else None
    return y, extra


# --------------------------- stage kernels ----------------------------------


def _stage1_kernel(x_ref, ws_ref, y1_ref, st_ref, *, H, W):
    Cout = y1_ref.shape[1]
    x = x_ref[0]                                                     # (Cin, P) f32
    acc1, idv = _conv3x3(x, ws_ref[...], H=H, W=W, Cout=Cout, n_extra=Cout)

    # bf16 HBM storage of the inter-stage activation; BN partial statistics
    # come from the f32 accumulator *before* the cast.
    y1_ref[0] = acc1.astype(y1_ref.dtype)
    st_ref[0] = jnp.concatenate(
        [jnp.sum(acc1, axis=1, keepdims=True),
         jnp.sum(acc1 * acc1, axis=1, keepdims=True),
         jnp.sum(idv, axis=1, keepdims=True),
         jnp.sum(idv * idv, axis=1, keepdims=True)], axis=1)         # (Cout, 4)


def _stage2_kernel(y1_ref, a1_ref, c1_ref, ws_ref, y2_ref, st_ref, *, H, W):
    Cout = y2_ref.shape[1]
    # BN1 (precomputed global batch affine) + ReLU in f32.
    act = jnp.maximum(
        y1_ref[0].astype(jnp.float32) * a1_ref[...] + c1_ref[...], 0.0)
    acc2, _ = _conv3x3(act, ws_ref[...], H=H, W=W, Cout=Cout)

    y2_ref[0] = acc2.astype(y2_ref.dtype)
    st_ref[0] = jnp.concatenate(
        [jnp.sum(acc2, axis=1, keepdims=True),
         jnp.sum(acc2 * acc2, axis=1, keepdims=True)], axis=1)       # (Cout, 2)


def _stage3_kernel(x_ref, y2_ref, wd_ref, a2_ref, c2_ref, ad_ref, cd_ref, out_ref):
    # Downsample 1x1 conv recomputed (cheap) instead of round-tripping HBM.
    idv = jnp.dot(wd_ref[...], x_ref[0].astype(jnp.bfloat16),
                  preferred_element_type=jnp.float32)
    out = jnp.maximum(y2_ref[0].astype(jnp.float32) * a2_ref[...] + c2_ref[...]
                      + idv * ad_ref[...] + cd_ref[...], 0.0)
    out_ref[0] = out.astype(out_ref.dtype)


# --------------------------- host-side wrapper ------------------------------


def pack_params(params, dtype=jnp.bfloat16):
    """One-time repacking of the module parameters into matmul-ready form."""
    w1, w2, wd, g1, b1, g2, b2, gd, bd = params
    Cin, Cout = w1.shape[2], w1.shape[3]

    def pack3x3(w, cin, cout):
        # (3,3,cin,cout) HWIO -> (3*cout, 3*cin): three (cout, 3*cin) slabs
        # stacked by dw = -1, 0, +1; each slab's columns are dh-major /
        # channel-minor, matching the [r_{-1}; r_0; r_{+1}] row layout.
        slabs = [jnp.transpose(w[:, kw].reshape(3 * cin, cout)) for kw in range(3)]
        return jnp.concatenate(slabs, axis=0)

    wdt = jnp.transpose(wd)                                          # (Cout, Cin)
    # 1x1 downsample fused into stage 1 as a 4th Cout-row slab that reads only
    # the centre (un-shifted) input rows.
    zeros = jnp.zeros((Cout, Cin), wd.dtype)
    wd_slab = jnp.concatenate([zeros, wdt, zeros], axis=1)           # (Cout, 3*Cin)
    ws1 = jnp.concatenate([pack3x3(w1, Cin, Cout), wd_slab], axis=0).astype(dtype)
    ws2 = pack3x3(w2, Cout, Cout).astype(dtype)
    return dict(ws1=ws1, ws2=ws2, wdt=wdt.astype(dtype),
                g1=g1, b1=b1, g2=g2, b2=b2, gd=gd, bd=bd)


def residual_block(x_nchw, packed):
    """ResidualBlock forward (stride=1, training-mode BatchNorm batch stats)."""
    N, Cin, H, W = x_nchw.shape
    P = H * W
    Cout = packed["wdt"].shape[0]
    ws1, ws2, wdt = packed["ws1"], packed["ws2"], packed["wdt"]

    # NCHW consumed directly: channels on sublanes, H*W pixels on lanes
    # (lane-dense, no NCHW<->NHWC transpose round trips through HBM).
    x = x_nchw.reshape(N, Cin, P)

    cparams = pltpu.CompilerParams(
        dimension_semantics=("parallel",),
        vmem_limit_bytes=_vmem_limit_bytes())
    grid = (N,)

    def img_spec(C):
        return pl.BlockSpec((1, C, P), lambda i: (i, 0, 0))

    def fixed(shape):
        return pl.BlockSpec(shape, lambda i: (0,) * len(shape))

    # ---- stage 1: conv1 (+ fused 1x1 downsample) + partial BN stats ---------
    y1, st1 = pl.pallas_call(
        functools.partial(_stage1_kernel, H=H, W=W),
        grid=grid,
        in_specs=[img_spec(Cin), fixed(ws1.shape)],
        out_specs=[img_spec(Cout),
                   pl.BlockSpec((1, Cout, 4), lambda i: (i, 0, 0))],
        out_shape=[jax.ShapeDtypeStruct((N, Cout, P), jnp.bfloat16),
                   jax.ShapeDtypeStruct((N, Cout, 4), jnp.float32)],
        compiler_params=cparams,
    )(x, ws1)

    # ---- tiny glue: finalize global batch statistics -> per-channel affine --
    Ptot = float(N * P)

    def bn_affine(s, ss, gamma, beta):
        mean = s / Ptot
        # TODO(synk): one-pass E[x^2]-E[x]^2 can lose precision for very large
        # activations/batches; a shifted (Welford-style) combine is more robust.
        var = jnp.maximum(ss / Ptot - mean * mean, 0.0)
        scale = gamma * lax.rsqrt(var + EPS)
        return scale.reshape(Cout, 1), (beta - mean * scale).reshape(Cout, 1)

    t1 = jnp.sum(st1, axis=0)                                        # (Cout, 4)
    a1, c1 = bn_affine(t1[:, 0], t1[:, 1], packed["g1"], packed["b1"])
    ad, cd = bn_affine(t1[:, 2], t1[:, 3], packed["gd"], packed["bd"])

    # ---- stage 2: BN1 + ReLU + conv2 + partial BN2 stats ---------------------
    y2, st2 = pl.pallas_call(
        functools.partial(_stage2_kernel, H=H, W=W),
        grid=grid,
        in_specs=[img_spec(Cout), fixed((Cout, 1)), fixed((Cout, 1)),
                  fixed(ws2.shape)],
        out_specs=[img_spec(Cout),
                   pl.BlockSpec((1, Cout, 2), lambda i: (i, 0, 0))],
        out_shape=[jax.ShapeDtypeStruct((N, Cout, P), jnp.bfloat16),
                   jax.ShapeDtypeStruct((N, Cout, 2), jnp.float32)],
        compiler_params=cparams,
    )(y1, a1, c1, ws2)

    t2 = jnp.sum(st2, axis=0)                                        # (Cout, 2)
    a2, c2 = bn_affine(t2[:, 0], t2[:, 1], packed["g2"], packed["b2"])

    # ---- stage 3: BN2 + downsample-BN + add + ReLU ---------------------------
    out = pl.pallas_call(
        _stage3_kernel,
        grid=grid,
        in_specs=[img_spec(Cin), img_spec(Cout), fixed(wdt.shape),
                  fixed((Cout, 1)), fixed((Cout, 1)),
                  fixed((Cout, 1)), fixed((Cout, 1))],
        out_specs=img_spec(Cout),
        out_shape=jax.ShapeDtypeStruct((N, Cout, P), jnp.float32),
        compiler_params=cparams,
    )(x, y2, wdt, a2, c2, ad, cd)

    return out.reshape(N, Cout, H, W)


# --------------------------- pure-JAX reference -----------------------------


def _reference(x_nchw, params):
    """Reference with the same precision policy (bf16 conv operands, f32 BN)."""
    w1, w2, wd, g1, b1, g2, b2, gd, bd = params
    x = jnp.transpose(x_nchw, (0, 2, 3, 1))                          # NHWC

    def conv(inp, w):
        dn = lax.conv_dimension_numbers(inp.shape, w.shape,
                                        ('NHWC', 'HWIO', 'NHWC'))
        return lax.conv_general_dilated(
            inp.astype(jnp.bfloat16), w.astype(jnp.bfloat16), (1, 1), 'SAME',
            dimension_numbers=dn, preferred_element_type=jnp.float32)

    def bn(y, g, b):
        m = jnp.mean(y, axis=(0, 1, 2), keepdims=True)
        v = jnp.mean((y - m) ** 2, axis=(0, 1, 2), keepdims=True)
        return (y - m) * lax.rsqrt(v + EPS) * g.reshape(1, 1, 1, -1) \
            + b.reshape(1, 1, 1, -1)

    out = jnp.maximum(bn(conv(x, w1), g1, b1), 0.0)
    out = bn(conv(out, w2), g2, b2)
    idd = bn(conv(x, wd.reshape(1, 1, *wd.shape)), gd, bd)
    out = jnp.maximum(out + idd, 0.0)
    return jnp.transpose(out, (0, 3, 1, 2))


if __name__ == "__main__":
    N, Cin, Cout, H, W = 2, 4, 8, 16, 16

    keys = jax.random.split(jax.random.PRNGKey(0), 10)
    # Synthetic params (shapes match nn.Conv2d [as HWIO] / nn.BatchNorm2d).
    w1 = jax.random.normal(keys[0], (3, 3, Cin, Cout), jnp.float32) * 0.1
    w2 = jax.random.normal(keys[1], (3, 3, Cout, Cout), jnp.float32) * 0.1
    wd = jax.random.normal(keys[2], (Cin, Cout), jnp.float32) * 0.1
    g1 = 1.0 + 0.1 * jax.random.normal(keys[3], (Cout,), jnp.float32)
    b1 = 0.1 * jax.random.normal(keys[4], (Cout,), jnp.float32)
    g2 = 1.0 + 0.1 * jax.random.normal(keys[5], (Cout,), jnp.float32)
    b2 = 0.1 * jax.random.normal(keys[6], (Cout,), jnp.float32)
    gd = 1.0 + 0.1 * jax.random.normal(keys[7], (Cout,), jnp.float32)
    bd = 0.1 * jax.random.normal(keys[8], (Cout,), jnp.float32)
    params = (w1, w2, wd, g1, b1, g2, b2, gd, bd)

    x = jax.random.normal(keys[9], (N, Cin, H, W), jnp.float32)

    packed = pack_params(params)             # one-time weight repacking (hoisted)
    fwd = jax.jit(residual_block)
    out = fwd(x, packed)
    jax.block_until_ready(out)

    ref = _reference(x, params)
    err = float(jnp.max(jnp.abs(out - ref)))
    assert out.shape == (N, Cout, H, W)
    assert err < 5e-2, f"max abs err {err}"

    print("KERNEL_OK")
</pallas_src>

<mosaic_0001>
module attributes {stable_mosaic.version = 11 : i64} {
  func.func @_stage1_kernel(%arg0: i32, %arg1: memref<1x4x256xf32, #tpu.memory_space<vmem>>, %arg2: memref<32x12xbf16, #tpu.memory_space<vmem>>, %arg3: memref<1x8x256xbf16, #tpu.memory_space<vmem>>, %arg4: memref<1x8x4xf32, #tpu.memory_space<vmem>>) attributes {dimension_semantics = [#tpu.dimension_semantics<parallel>], iteration_bounds = array<i64: 2>, scalar_prefetch = 0 : i64, scratch_operands = 0 : i64, tpu.core_type = #tpu.core_type<tc>, window_params = [{transform_indices = @transform_0, window_bounds = array<i64: 1, 4, 256>}, {pipeline_mode = #tpu.pipeline_mode<synchronous>, transform_indices = @transform_1, window_bounds = array<i64: 32, 12>}, {transform_indices = @transform_2, window_bounds = array<i64: 1, 8, 256>}, {transform_indices = @transform_3, window_bounds = array<i64: 1, 8, 4>}]} {
    %c0 = arith.constant 0 : index
    %c0_0 = arith.constant 0 : index
    %c0_1 = arith.constant 0 : index
    %0 = vector.load %arg1[%c0, %c0_0, %c0_1] : memref<1x4x256xf32, #tpu.memory_space<vmem>>, vector<1x4x256xf32>
    %1 = vector.shape_cast %0 : vector<1x4x256xf32> to vector<4x256xf32>
    %c0_2 = arith.constant 0 : index
    %c0_3 = arith.constant 0 : index
    %2 = vector.load %arg2[%c0_2, %c0_3] : memref<32x12xbf16, #tpu.memory_space<vmem>>, vector<32x12xbf16>
    %3 = tpu.iota {dimensions = array<i32: 1>} : vector<1x256xi32>
    %c15_i32 = arith.constant 15 : i32
    %4 = vector.broadcast %c15_i32 : i32 to vector<1x256xi32>
    %5 = arith.andi %3, %4 : vector<1x256xi32>
    %c16_i32 = arith.constant 16 : i32
    %6 = vector.broadcast %c16_i32 : i32 to vector<1x256xi32>
    %7 = arith.cmpi sge, %3, %6 : vector<1x256xi32>
    %c240_i32 = arith.constant 240 : i32
    %8 = vector.broadcast %c240_i32 : i32 to vector<1x256xi32>
    %9 = arith.cmpi slt, %3, %8 : vector<1x256xi32>
    %c1_i32 = arith.constant 1 : i32
    %10 = vector.broadcast %c1_i32 : i32 to vector<1x256xi32>
    %11 = arith.cmpi sge, %5, %10 : vector<1x256xi32>
    %c14_i32 = arith.constant 14 : i32
    %12 = vector.broadcast %c14_i32 : i32 to vector<1x256xi32>
    %13 = arith.cmpi sle, %5, %12 : vector<1x256xi32>
    %c16_i32_4 = arith.constant 16 : i32
    %14 = tpu.dynamic_rotate %1 by %c16_i32_4 dim 1 : vector<4x256xf32>, i32 -> vector<4x256xf32>
    %cst = arith.constant 0.000000e+00 : f32
    %15 = vector.shape_cast %7 : vector<1x256xi1> to vector<1x256xi1>
    %16 = vector.broadcast %15 : vector<1x256xi1> to vector<4x256xi1>
    %17 = vector.broadcast %cst : f32 to vector<4x256xf32>
    %18 = arith.select %16, %14, %17 : vector<4x256xi1>, vector<4x256xf32>
    %c240_i32_5 = arith.constant 240 : i32
    %19 = tpu.dynamic_rotate %1 by %c240_i32_5 dim 1 : vector<4x256xf32>, i32 -> vector<4x256xf32>
    %cst_6 = arith.constant 0.000000e+00 : f32
    %20 = vector.shape_cast %9 : vector<1x256xi1> to vector<1x256xi1>
    %21 = vector.broadcast %20 : vector<1x256xi1> to vector<4x256xi1>
    %22 = vector.broadcast %cst_6 : f32 to vector<4x256xf32>
    %23 = arith.select %21, %19, %22 : vector<4x256xi1>, vector<4x256xf32>
    %24 = tpu.concatenate %18, %1, %23 in 0 : vector<4x256xf32>, vector<4x256xf32>, vector<4x256xf32> -> vector<12x256xf32>
    %25 = arith.truncf %24 : vector<12x256xf32> to vector<12x256xbf16>
    %cst_7 = arith.constant dense<0.000000e+00> : vector<32x256xf32>
    %26 = tpu.matmul %2, %25, %cst_7 {dimension_numbers = #tpu.dot_dimension_numbers<[1], [0], [0], [1], [0, 0, 1, 1], [], []>} : vector<32x12xbf16>, vector<12x256xbf16>, vector<32x256xf32> -> vector<32x256xf32>
    %27 = vector.extract_strided_slice %26 {offsets = [0, 0], sizes = [8, 256], strides = [1, 1]} : vector<32x256xf32> to vector<8x256xf32>
    %28 = vector.extract_strided_slice %26 {offsets = [8, 0], sizes = [8, 256], strides = [1, 1]} : vector<32x256xf32> to vector<8x256xf32>
    %29 = vector.extract_strided_slice %26 {offsets = [16, 0], sizes = [8, 256], strides = [1, 1]} : vector<32x256xf32> to vector<8x256xf32>
    %c1_i32_8 = arith.constant 1 : i32
    %30 = tpu.dynamic_rotate %27 by %c1_i32_8 dim 1 : vector<8x256xf32>, i32 -> vector<8x256xf32>
    %cst_9 = arith.constant 0.000000e+00 : f32
    %31 = vector.shape_cast %11 : vector<1x256xi1> to vector<1x256xi1>
    %32 = vector.broadcast %31 : vector<1x256xi1> to vector<8x256xi1>
    %33 = vector.broadcast %cst_9 : f32 to vector<8x256xf32>
    %34 = arith.select %32, %30, %33 : vector<8x256xi1>, vector<8x256xf32>
    %35 = arith.addf %28, %34 : vector<8x256xf32>
    %c255_i32 = arith.constant 255 : i32
    %36 = tpu.dynamic_rotate %29 by %c255_i32 dim 1 : vector<8x256xf32>, i32 -> vector<8x256xf32>
    %cst_10 = arith.constant 0.000000e+00 : f32
    %37 = vector.shape_cast %13 : vector<1x256xi1> to vector<1x256xi1>
    %38 = vector.broadcast %37 : vector<1x256xi1> to vector<8x256xi1>
    %39 = vector.broadcast %cst_10 : f32 to vector<8x256xf32>
    %40 = arith.select %38, %36, %39 : vector<8x256xi1>, vector<8x256xf32>
    %41 = arith.addf %35, %40 : vector<8x256xf32>
    %42 = vector.extract_strided_slice %26 {offsets = [24, 0], sizes = [8, 256], strides = [1, 1]} : vector<32x256xf32> to vector<8x256xf32>
    %43 = arith.truncf %41 : vector<8x256xf32> to vector<8x256xbf16>
    %c0_11 = arith.constant 0 : index
    %c0_12 = arith.constant 0 : index
    %c0_13 = arith.constant 0 : index
    %44 = vector.load %arg3[%c0_11, %c0_12, %c0_13] : memref<1x8x256xbf16, #tpu.memory_space<vmem>>, vector<1x8x256xbf16>
    %45 = vector.shape_cast %44 : vector<1x8x256xbf16> to vector<8x256xbf16>
    %46 = vector.shape_cast %43 : vector<8x256xbf16> to vector<1x8x256xbf16>
    tpu.vector_store %arg3[%c0_11, %c0_12, %c0_13], %46 {strides = array<i32>} : memref<1x8x256xbf16, #tpu.memory_space<vmem>>, vector<1x8x256xbf16>,
    %cst_14 = arith.constant dense<0.000000e+00> : vector<8xf32>
    %47 = vector.multi_reduction <add>, %41, %cst_14 [1] : vector<8x256xf32> to vector<8xf32>
    %48 = vector.shape_cast %47 : vector<8xf32> to vector<8x1xf32>
    %49 = arith.mulf %41, %41 : vector<8x256xf32>
    %cst_15 = arith.constant dense<0.000000e+00> : vector<8xf32>
    %50 = vector.multi_reduction <add>, %49, %cst_15 [1] : vector<8x256xf32> to vector<8xf32>
    %51 = vector.shape_cast %50 : vector<8xf32> to vector<8x1xf32>
    %cst_16 = arith.constant dense<0.000000e+00> : vector<8xf32>
    %52 = vector.multi_reduction <add>, %42, %cst_16 [1] : vector<8x256xf32> to vector<8xf32>
    %53 = vector.shape_cast %52 : vector<8xf32> to vector<8x1xf32>
    %54 = arith.mulf %42, %42 : vector<8x256xf32>
    %cst_17 = arith.constant dense<0.000000e+00> : vector<8xf32>
    %55 = vector.multi_reduction <add>, %54, %cst_17 [1] : vector<8x256xf32> to vector<8xf32>
    %56 = vector.shape_cast %55 : vector<8xf32> to vector<8x1xf32>
    %57 = tpu.concatenate %48, %51, %53, %56 in 1 : vector<8x1xf32>, vector<8x1xf32>, vector<8x1xf32>, vector<8x1xf32> -> vector<8x4xf32>
    %c0_18 = arith.constant 0 : index
    %c0_19 = arith.constant 0 : index
    %c0_20 = arith.constant 0 : index
    %58 = vector.load %arg4[%c0_18, %c0_19, %c0_20] : memref<1x8x4xf32, #tpu.memory_space<vmem>>, vector<1x8x4xf32>
    %59 = vector.shape_cast %58 : vector<1x8x4xf32> to vector<8x4xf32>
    %60 = vector.shape_cast %57 : vector<8x4xf32> to vector<1x8x4xf32>
    tpu.vector_store %arg4[%c0_18, %c0_19, %c0_20], %60 {strides = array<i32>} : memref<1x8x4xf32, #tpu.memory_space<vmem>>, vector<1x8x4xf32>,
    return
  }
  func.func @transform_0(%arg0: i32) -> (i32, i32, i32) {
    %c0_i32 = arith.constant 0 : i32
    %c0_i32_0 = arith.constant 0 : i32
    %c0_i32_1 = arith.constant 0 : i32
    return %arg0, %c0_i32, %c0_i32_0 : i32, i32, i32
  }
  func.func @transform_1(%arg0: i32) -> (i32, i32) {
    %c0_i32 = arith.constant 0 : i32
    %c0_i32_0 = arith.constant 0 : i32
    %c0_i32_1 = arith.constant 0 : i32
    return %c0_i32, %c0_i32_0 : i32, i32
  }
  func.func @transform_2(%arg0: i32) -> (i32, i32, i32) {
    %c0_i32 = arith.constant 0 : i32
    %c0_i32_0 = arith.constant 0 : i32
    %c0_i32_1 = arith.constant 0 : i32
    return %arg0, %c0_i32, %c0_i32_0 : i32, i32, i32
  }
  func.func @transform_3(%arg0: i32) -> (i32, i32, i32) {
    %c0_i32 = arith.constant 0 : i32
    %c0_i32_0 = arith.constant 0 : i32
    %c0_i32_1 = arith.constant 0 : i32
    return %arg0, %c0_i32, %c0_i32_0 : i32, i32, i32
  }
}

module attributes {stable_mosaic.version = 11 : i64} {
  func.func @_stage3_kernel(%arg0: i32, %arg1: memref<1x4x256xf32, #tpu.memory_space<vmem>>, %arg2: memref<1x8x256xbf16, #tpu.memory_space<vmem>>, %arg3: memref<8x4xbf16, #tpu.memory_space<vmem>>, %arg4: memref<8x1xf32, #tpu.memory_space<vmem>>, %arg5: memref<8x1xf32, #tpu.memory_space<vmem>>, %arg6: memref<8x1xf32, #tpu.memory_space<vmem>>, %arg7: memref<8x1xf32, #tpu.memory_space<vmem>>, %arg8: memref<1x8x256xf32, #tpu.memory_space<vmem>>) attributes {dimension_semantics = [#tpu.dimension_semantics<parallel>], iteration_bounds = array<i64: 2>, scalar_prefetch = 0 : i64, scratch_operands = 0 : i64, tpu.core_type = #tpu.core_type<tc>, window_params = [{transform_indices = @transform_0, window_bounds = array<i64: 1, 4, 256>}, {transform_indices = @transform_1, window_bounds = array<i64: 1, 8, 256>}, {pipeline_mode = #tpu.pipeline_mode<synchronous>, transform_indices = @transform_2, window_bounds = array<i64: 8, 4>}, {pipeline_mode = #tpu.pipeline_mode<synchronous>, transform_indices = @transform_3, window_bounds = array<i64: 8, 1>}, {pipeline_mode = #tpu.pipeline_mode<synchronous>, transform_indices = @transform_4, window_bounds = array<i64: 8, 1>}, {pipeline_mode = #tpu.pipeline_mode<synchronous>, transform_indices = @transform_5, window_bounds = array<i64: 8, 1>}, {pipeline_mode = #tpu.pipeline_mode<synchronous>, transform_indices = @transform_6, window_bounds = array<i64: 8, 1>}, {transform_indices = @transform_7, window_bounds = array<i64: 1, 8, 256>}]} {
    %c0 = arith.constant 0 : index
    %c0_0 = arith.constant 0 : index
    %0 = vector.load %arg3[%c0, %c0_0] : memref<8x4xbf16, #tpu.memory_space<vmem>>, vector<8x4xbf16>
    %c0_1 = arith.constant 0 : index
    %c0_2 = arith.constant 0 : index
    %c0_3 = arith.constant 0 : index
    %1 = vector.load %arg1[%c0_1, %c0_2, %c0_3] : memref<1x4x256xf32, #tpu.memory_space<vmem>>, vector<1x4x256xf32>
    %2 = vector.shape_cast %1 : vector<1x4x256xf32> to vector<4x256xf32>
    %3 = arith.truncf %2 : vector<4x256xf32> to vector<4x256xbf16>
    %cst = arith.constant dense<0.000000e+00> : vector<8x256xf32>
    %4 = tpu.matmul %0, %3, %cst {dimension_numbers = #tpu.dot_dimension_numbers<[1], [0], [0], [1], [0, 0, 1, 1], [], []>} : vector<8x4xbf16>, vector<4x256xbf16>, vector<8x256xf32> -> vector<8x256xf32>
    %c0_4 = arith.constant 0 : index
    %c0_5 = arith.constant 0 : index
    %c0_6 = arith.constant 0 : index
    %5 = vector.load %arg2[%c0_4, %c0_5, %c0_6] : memref<1x8x256xbf16, #tpu.memory_space<vmem>>, vector<1x8x256xbf16>
    %6 = vector.shape_cast %5 : vector<1x8x256xbf16> to vector<8x256xbf16>
    %7 = arith.extf %6 : vector<8x256xbf16> to vector<8x256xf32>
    %c0_7 = arith.constant 0 : index
    %c0_8 = arith.constant 0 : index
    %8 = vector.load %arg4[%c0_7, %c0_8] : memref<8x1xf32, #tpu.memory_space<vmem>>, vector<8x1xf32>
    %9 = vector.broadcast %8 : vector<8x1xf32> to vector<8x256xf32>
    %10 = arith.mulf %7, %9 : vector<8x256xf32>
    %c0_9 = arith.constant 0 : index
    %c0_10 = arith.constant 0 : index
    %11 = vector.load %arg5[%c0_9, %c0_10] : memref<8x1xf32, #tpu.memory_space<vmem>>, vector<8x1xf32>
    %12 = vector.broadcast %11 : vector<8x1xf32> to vector<8x256xf32>
    %13 = arith.addf %10, %12 : vector<8x256xf32>
    %c0_11 = arith.constant 0 : index
    %c0_12 = arith.constant 0 : index
    %14 = vector.load %arg6[%c0_11, %c0_12] : memref<8x1xf32, #tpu.memory_space<vmem>>, vector<8x1xf32>
    %15 = vector.broadcast %14 : vector<8x1xf32> to vector<8x256xf32>
    %16 = arith.mulf %4, %15 : vector<8x256xf32>
    %17 = arith.addf %13, %16 : vector<8x256xf32>
    %c0_13 = arith.constant 0 : index
    %c0_14 = arith.constant 0 : index
    %18 = vector.load %arg7[%c0_13, %c0_14] : memref<8x1xf32, #tpu.memory_space<vmem>>, vector<8x1xf32>
    %19 = vector.broadcast %18 : vector<8x1xf32> to vector<8x256xf32>
    %20 = arith.addf %17, %19 : vector<8x256xf32>
    %cst_15 = arith.constant 0.000000e+00 : f32
    %21 = vector.broadcast %cst_15 : f32 to vector<8x256xf32>
    %22 = arith.maximumf %20, %21 : vector<8x256xf32>
    %c0_16 = arith.constant 0 : index
    %c0_17 = arith.constant 0 : index
    %c0_18 = arith.constant 0 : index
    %23 = vector.load %arg8[%c0_16, %c0_17, %c0_18] : memref<1x8x256xf32, #tpu.memory_space<vmem>>, vector<1x8x256xf32>
    %24 = vector.shape_cast %23 : vector<1x8x256xf32> to vector<8x256xf32>
    %25 = vector.shape_cast %22 : vector<8x256xf32> to vector<1x8x256xf32>
    tpu.vector_store %arg8[%c0_16, %c0_17, %c0_18], %25 {strides = array<i32>} : memref<1x8x256xf32, #tpu.memory_space<vmem>>, vector<1x8x256xf32>,
    return
  }
  func.func @transform_0(%arg0: i32) -> (i32, i32, i32) {
    %c0_i32 = arith.constant 0 : i32
    %c0_i32_0 = arith.constant 0 : i32
    %c0_i32_1 = arith.constant 0 : i32
    return %arg0, %c0_i32, %c0_i32_0 : i32, i32, i32
  }
  func.func @transform_1(%arg0: i32) -> (i32, i32, i32) {
    %c0_i32 = arith.constant 0 : i32
    %c0_i32_0 = arith.constant 0 : i32
    %c0_i32_1 = arith.constant 0 : i32
    return %arg0, %c0_i32, %c0_i32_0 : i32, i32, i32
  }
  func.func @transform_2(%arg0: i32) -> (i32, i32) {
    %c0_i32 = arith.constant 0 : i32
    %c0_i32_0 = arith.constant 0 : i32
    %c0_i32_1 = arith.constant 0 : i32
    return %c0_i32, %c0_i32_0 : i32, i32
  }
  func.func @transform_3(%arg0: i32) -> (i32, i32) {
    %c0_i32 = arith.constant 0 : i32
    %c0_i32_0 = arith.constant 0 : i32
    %c0_i32_1 = arith.constant 0 : i32
    return %c0_i32, %c0_i32_0 : i32, i32
  }
  func.func @transform_4(%arg0: i32) -> (i32, i32) {
    %c0_i32 = arith.constant 0 : i32
    %c0_i32_0 = arith.constant 0 : i32
    %c0_i32_1 = arith.constant 0 : i32
    return %c0_i32, %c0_i32_0 : i32, i32
  }
  func.func @transform_5(%arg0: i32) -> (i32, i32) {
    %c0_i32 = arith.constant 0 : i32
    %c0_i32_0 = arith.constant 0 : i32
    %c0_i32_1 = arith.constant 0 : i32
    return %c0_i32, %c0_i32_0 : i32, i32
  }
  func.func @transform_6(%arg0: i32) -> (i32, i32) {
    %c0_i32 = arith.constant 0 : i32
    %c0_i32_0 = arith.constant 0 : i32
    %c0_i32_1 = arith.constant 0 : i32
    return %c0_i32, %c0_i32_0 : i32, i32
  }
  func.func @transform_7(%arg0: i32) -> (i32, i32, i32) {
    %c0_i32 = arith.constant 0 : i32
    %c0_i32_0 = arith.constant 0 : i32
    %c0_i32_1 = arith.constant 0 : i32
    return %arg0, %c0_i32, %c0_i32_0 : i32, i32, i32
  }
}

module attributes {stable_mosaic.version = 11 : i64} {
  func.func @_stage2_kernel(%arg0: i32, %arg1: memref<1x8x256xbf16, #tpu.memory_space<vmem>>, %arg2: memref<8x1xf32, #tpu.memory_space<vmem>>, %arg3: memref<8x1xf32, #tpu.memory_space<vmem>>, %arg4: memref<24x24xbf16, #tpu.memory_space<vmem>>, %arg5: memref<1x8x256xbf16, #tpu.memory_space<vmem>>, %arg6: memref<1x8x2xf32, #tpu.memory_space<vmem>>) attributes {dimension_semantics = [#tpu.dimension_semantics<parallel>], iteration_bounds = array<i64: 2>, scalar_prefetch = 0 : i64, scratch_operands = 0 : i64, tpu.core_type = #tpu.core_type<tc>, window_params = [{transform_indices = @transform_0, window_bounds = array<i64: 1, 8, 256>}, {pipeline_mode = #tpu.pipeline_mode<synchronous>, transform_indices = @transform_1, window_bounds = array<i64: 8, 1>}, {pipeline_mode = #tpu.pipeline_mode<synchronous>, transform_indices = @transform_2, window_bounds = array<i64: 8, 1>}, {pipeline_mode = #tpu.pipeline_mode<synchronous>, transform_indices = @transform_3, window_bounds = array<i64: 24, 24>}, {transform_indices = @transform_4, window_bounds = array<i64: 1, 8, 256>}, {transform_indices = @transform_5, window_bounds = array<i64: 1, 8, 2>}]} {
    %c0 = arith.constant 0 : index
    %c0_0 = arith.constant 0 : index
    %c0_1 = arith.constant 0 : index
    %0 = vector.load %arg1[%c0, %c0_0, %c0_1] : memref<1x8x256xbf16, #tpu.memory_space<vmem>>, vector<1x8x256xbf16>
    %1 = vector.shape_cast %0 : vector<1x8x256xbf16> to vector<8x256xbf16>
    %2 = arith.extf %1 : vector<8x256xbf16> to vector<8x256xf32>
    %c0_2 = arith.constant 0 : index
    %c0_3 = arith.constant 0 : index
    %3 = vector.load %arg2[%c0_2, %c0_3] : memref<8x1xf32, #tpu.memory_space<vmem>>, vector<8x1xf32>
    %4 = vector.broadcast %3 : vector<8x1xf32> to vector<8x256xf32>
    %5 = arith.mulf %2, %4 : vector<8x256xf32>
    %c0_4 = arith.constant 0 : index
    %c0_5 = arith.constant 0 : index
    %6 = vector.load %arg3[%c0_4, %c0_5] : memref<8x1xf32, #tpu.memory_space<vmem>>, vector<8x1xf32>
    %7 = vector.broadcast %6 : vector<8x1xf32> to vector<8x256xf32>
    %8 = arith.addf %5, %7 : vector<8x256xf32>
    %cst = arith.constant 0.000000e+00 : f32
    %9 = vector.broadcast %cst : f32 to vector<8x256xf32>
    %10 = arith.maximumf %8, %9 : vector<8x256xf32>
    %c0_6 = arith.constant 0 : index
    %c0_7 = arith.constant 0 : index
    %11 = vector.load %arg4[%c0_6, %c0_7] : memref<24x24xbf16, #tpu.memory_space<vmem>>, vector<24x24xbf16>
    %12 = tpu.iota {dimensions = array<i32: 1>} : vector<1x256xi32>
    %c15_i32 = arith.constant 15 : i32
    %13 = vector.broadcast %c15_i32 : i32 to vector<1x256xi32>
    %14 = arith.andi %12, %13 : vector<1x256xi32>
    %c16_i32 = arith.constant 16 : i32
    %15 = vector.broadcast %c16_i32 : i32 to vector<1x256xi32>
    %16 = arith.cmpi sge, %12, %15 : vector<1x256xi32>
    %c240_i32 = arith.constant 240 : i32
    %17 = vector.broadcast %c240_i32 : i32 to vector<1x256xi32>
    %18 = arith.cmpi slt, %12, %17 : vector<1x256xi32>
    %c1_i32 = arith.constant 1 : i32
    %19 = vector.broadcast %c1_i32 : i32 to vector<1x256xi32>
    %20 = arith.cmpi sge, %14, %19 : vector<1x256xi32>
    %c14_i32 = arith.constant 14 : i32
    %21 = vector.broadcast %c14_i32 : i32 to vector<1x256xi32>
    %22 = arith.cmpi sle, %14, %21 : vector<1x256xi32>
    %c16_i32_8 = arith.constant 16 : i32
    %23 = tpu.dynamic_rotate %10 by %c16_i32_8 dim 1 : vector<8x256xf32>, i32 -> vector<8x256xf32>
    %cst_9 = arith.constant 0.000000e+00 : f32
    %24 = vector.shape_cast %16 : vector<1x256xi1> to vector<1x256xi1>
    %25 = vector.broadcast %24 : vector<1x256xi1> to vector<8x256xi1>
    %26 = vector.broadcast %cst_9 : f32 to vector<8x256xf32>
    %27 = arith.select %25, %23, %26 : vector<8x256xi1>, vector<8x256xf32>
    %c240_i32_10 = arith.constant 240 : i32
    %28 = tpu.dynamic_rotate %10 by %c240_i32_10 dim 1 : vector<8x256xf32>, i32 -> vector<8x256xf32>
    %cst_11 = arith.constant 0.000000e+00 : f32
    %29 = vector.shape_cast %18 : vector<1x256xi1> to vector<1x256xi1>
    %30 = vector.broadcast %29 : vector<1x256xi1> to vector<8x256xi1>
    %31 = vector.broadcast %cst_11 : f32 to vector<8x256xf32>
    %32 = arith.select %30, %28, %31 : vector<8x256xi1>, vector<8x256xf32>
    %33 = tpu.concatenate %27, %10, %32 in 0 : vector<8x256xf32>, vector<8x256xf32>, vector<8x256xf32> -> vector<24x256xf32>
    %34 = arith.truncf %33 : vector<24x256xf32> to vector<24x256xbf16>
    %cst_12 = arith.constant dense<0.000000e+00> : vector<24x256xf32>
    %35 = tpu.matmul %11, %34, %cst_12 {dimension_numbers = #tpu.dot_dimension_numbers<[1], [0], [0], [1], [0, 0, 1, 1], [], []>} : vector<24x24xbf16>, vector<24x256xbf16>, vector<24x256xf32> -> vector<24x256xf32>
    %36 = vector.extract_strided_slice %35 {offsets = [0, 0], sizes = [8, 256], strides = [1, 1]} : vector<24x256xf32> to vector<8x256xf32>
    %37 = vector.extract_strided_slice %35 {offsets = [8, 0], sizes = [8, 256], strides = [1, 1]} : vector<24x256xf32> to vector<8x256xf32>
    %38 = vector.extract_strided_slice %35 {offsets = [16, 0], sizes = [8, 256], strides = [1, 1]} : vector<24x256xf32> to vector<8x256xf32>
    %c1_i32_13 = arith.constant 1 : i32
    %39 = tpu.dynamic_rotate %36 by %c1_i32_13 dim 1 : vector<8x256xf32>, i32 -> vector<8x256xf32>
    %cst_14 = arith.constant 0.000000e+00 : f32
    %40 = vector.shape_cast %20 : vector<1x256xi1> to vector<1x256xi1>
    %41 = vector.broadcast %40 : vector<1x256xi1> to vector<8x256xi1>
    %42 = vector.broadcast %cst_14 : f32 to vector<8x256xf32>
    %43 = arith.select %41, %39, %42 : vector<8x256xi1>, vector<8x256xf32>
    %44 = arith.addf %37, %43 : vector<8x256xf32>
    %c255_i32 = arith.constant 255 : i32
    %45 = tpu.dynamic_rotate %38 by %c255_i32 dim 1 : vector<8x256xf32>, i32 -> vector<8x256xf32>
    %cst_15 = arith.constant 0.000000e+00 : f32
    %46 = vector.shape_cast %22 : vector<1x256xi1> to vector<1x256xi1>
    %47 = vector.broadcast %46 : vector<1x256xi1> to vector<8x256xi1>
    %48 = vector.broadcast %cst_15 : f32 to vector<8x256xf32>
    %49 = arith.select %47, %45, %48 : vector<8x256xi1>, vector<8x256xf32>
    %50 = arith.addf %44, %49 : vector<8x256xf32>
    %51 = arith.truncf %50 : vector<8x256xf32> to vector<8x256xbf16>
    %c0_16 = arith.constant 0 : index
    %c0_17 = arith.constant 0 : index
    %c0_18 = arith.constant 0 : index
    %52 = vector.load %arg5[%c0_16, %c0_17, %c0_18] : memref<1x8x256xbf16, #tpu.memory_space<vmem>>, vector<1x8x256xbf16>
    %53 = vector.shape_cast %52 : vector<1x8x256xbf16> to vector<8x256xbf16>
    %54 = vector.shape_cast %51 : vector<8x256xbf16> to vector<1x8x256xbf16>
    tpu.vector_store %arg5[%c0_16, %c0_17, %c0_18], %54 {strides = array<i32>} : memref<1x8x256xbf16, #tpu.memory_space<vmem>>, vector<1x8x256xbf16>,
    %cst_19 = arith.constant dense<0.000000e+00> : vector<8xf32>
    %55 = vector.multi_reduction <add>, %50, %cst_19 [1] : vector<8x256xf32> to vector<8xf32>
    %56 = vector.shape_cast %55 : vector<8xf32> to vector<8x1xf32>
    %57 = arith.mulf %50, %50 : vector<8x256xf32>
    %cst_20 = arith.constant dense<0.000000e+00> : vector<8xf32>
    %58 = vector.multi_reduction <add>, %57, %cst_20 [1] : vector<8x256xf32> to vector<8xf32>
    %59 = vector.shape_cast %58 : vector<8xf32> to vector<8x1xf32>
    %60 = tpu.concatenate %56, %59 in 1 : vector<8x1xf32>, vector<8x1xf32> -> vector<8x2xf32>
    %c0_21 = arith.constant 0 : index
    %c0_22 = arith.constant 0 : index
    %c0_23 = arith.constant 0 : index
    %61 = vector.load %arg6[%c0_21, %c0_22, %c0_23] : memref<1x8x2xf32, #tpu.memory_space<vmem>>, vector<1x8x2xf32>
    %62 = vector.shape_cast %61 : vector<1x8x2xf32> to vector<8x2xf32>
    %63 = vector.shape_cast %60 : vector<8x2xf32> to vector<1x8x2xf32>
    tpu.vector_store %arg6[%c0_21, %c0_22, %c0_23], %63 {strides = array<i32>} : memref<1x8x2xf32, #tpu.memory_space<vmem>>, vector<1x8x2xf32>,
    return
  }
  func.func @transform_0(%arg0: i32) -> (i32, i32, i32) {
    %c0_i32 = arith.constant 0 : i32
    %c0_i32_0 = arith.constant 0 : i32
    %c0_i32_1 = arith.constant 0 : i32
    return %arg0, %c0_i32, %c0_i32_0 : i32, i32, i32
  }
  func.func @transform_1(%arg0: i32) -> (i32, i32) {
    %c0_i32 = arith.constant 0 : i32
    %c0_i32_0 = arith.constant 0 : i32
    %c0_i32_1 = arith.constant 0 : i32
    return %c0_i32, %c0_i32_0 : i32, i32
  }
  func.func @transform_2(%arg0: i32) -> (i32, i32) {
    %c0_i32 = arith.constant 0 : i32
    %c0_i32_0 = arith.constant 0 : i32
    %c0_i32_1 = arith.constant 0 : i32
    return %c0_i32, %c0_i32_0 : i32, i32
  }
  func.func @transform_3(%arg0: i32) -> (i32, i32) {
    %c0_i32 = arith.constant 0 : i32
    %c0_i32_0 = arith.constant 0 : i32
    %c0_i32_1 = arith.constant 0 : i32
    return %c0_i32, %c0_i32_0 : i32, i32
  }
  func.func @transform_4(%arg0: i32) -> (i32, i32, i32) {
    %c0_i32 = arith.constant 0 : i32
    %c0_i32_0 = arith.constant 0 : i32
    %c0_i32_1 = arith.constant 0 : i32
    return %arg0, %c0_i32, %c0_i32_0 : i32, i32, i32
  }
  func.func @transform_5(%arg0: i32) -> (i32, i32, i32) {
    %c0_i32 = arith.constant 0 : i32
    %c0_i32_0 = arith.constant 0 : i32
    %c0_i32_1 = arith.constant 0 : i32
    return %arg0, %c0_i32, %c0_i32_0 : i32, i32, i32
  }
}

</mosaic_0001>

<bundles_post_ra>
// kernel: residual_block.5
= control target key start
LH: loop header
LB: loop body
LE: loop exit
PB: predicated region body
PF: predicated region fallthrough
CT: control target
= control target key end

     0   :  { %s546_s24 = smov 0   ;;  %s585_s0 = inlined_call_operand.vmem [shape: f32[2,4,256], index: 0, kind: input, shape index: {}]   ;;  %s586_s1 = inlined_call_operand.vmem [shape: bf16[2,8,256], index: 1, kind: input, shape index: {}]   ;;  %s587_s2 = inlined_call_operand.vmem [shape: bf16[8,4], index: 2, kind: input, shape index: {}]   ;;  %s588_s3 = inlined_call_operand.vmem [shape: f32[8,1], index: 3, kind: input, shape index: {}]   ;;  %s589_s4 = inlined_call_operand.vmem [shape: f32[8,1], index: 4, kind: input, shape index: {}]   ;;  %s590_s5 = inlined_call_operand.vmem [shape: f32[8,1], index: 5, kind: input, shape index: {}]   ;;  %s591_s6 = inlined_call_operand.vmem [shape: f32[8,1], index: 6, kind: input, shape index: {}]   ;;  %s592_s7 = inlined_call_operand.vmem [shape: f32[2,8,256], index: 7, kind: output, shape index: {}]  }
   0x1 LB: > { %s467_s25 = sadd.s32 4294967295, %s503_s24   ;;  %p471_p0 = scmp.ge.s32.totalorder %s503_s24, 1  ;;  %s503_s24 = sphi %s546_s24, %s17_s24  }
   0x2   : > { %p247_p1 = scmp.lt.s32.totalorder %s503_s24, 3 }
   0x4   : > { %p248_p2 = pnand %p471_p0, %p247_p1 }
   0x5   : > { %p284_p3 = scmp.lt.s32.totalorder (!%p248_p2), %s467_s25, 1  ;;  %v505_v0 = vmov (!%p248_p2), 0   ;;  %v362_v1 = vld [vmem:[%s588_s3] sm:$0xff] (!%p248_p2)  ;;  %vm311_vm0 = vcmask (!%p248_p2), 1041408   ;;  %vm307_vm1 = vcmask (!%p248_p2), 31744  }
   0x6   : > { %251 = sbr.rel (%p248_p2) target bundleno = 247 (0xf7), region = 48  ;;  %350 = vmatprep.mubr.bf16.mxu0 (!%p248_p2), %v505_v0  ;;  %494 = vset.pattern.permute.xlu0 (!%p248_p2), %v505_v0  ;;  %v378_v2 = vld [vmem:[%s590_s5] sm:$0xff] (!%p248_p2) }
   0x7   : > { %365 = vperm.xlu0 (!%p248_p2), %494, %v362_v1   ;;  %495 = vset.pattern.permute.xlu1 (!%p248_p2), %v505_v0  ;;  %v370_v3 = vld [vmem:[%s589_s4] sm:$0xff] (!%p248_p2) }
   0x8   : > { %381 = vperm.xlu1 (!%p248_p2), %495, %v378_v2   ;;  %v388_v4 = vld [vmem:[%s591_s6] sm:$0xff] (!%p248_p2) }
   0x9   : > { %v300_v10 = vld [vmem:[%s587_s2] sm:$0xf] (!%p248_p2) }
   0xb   : > { %373 = vperm.xlu0 (!%p248_p2), %494, %v370_v3  }
   0xc   : > { %391 = vperm.xlu1 (!%p248_p2), %495, %v388_v4  }
   0xd   : > { %s594_s25 = smov (!%p284_p3, %s467_s25), 1 }
   0xe   : > { %s482_s9 = sshll.u32 %s594_s25, 3  ;;  %s484_s20 = sshll.u32 %s594_s25, 4 }
   0xf   : > { %s288_s14 = scalar_lea.vmem %s585_s0, %s482_s9  ;;  %s293_s19 = scalar_lea.vmem %s586_s1, %s482_s9 }
  0x10   : > { %v301_v5 = vld [vmem:[%s288_s14] sm:$0xff]  ;;  %s298_s23 = scalar_lea.vmem %s592_s7, %s484_s20 }
  0x11   : > { %v303_v6 = vcombine.high %v301_v5, %v301_v5  ;;  %v305_v7 = vpack.c.bf16 %v301_v5, %v301_v5  ;;  %v359_v11 = vld [vmem:[%s293_s19] sm:$0xff] }
  0x12   : > { %v360_v13 = vunpack.c.l.bf16 %v359_v11  ;;  %v361_v14 = vunpack.c.h.bf16 %v359_v11 }
  0x13   : > { %v306_v8 = vpack.c.bf16 %v303_v6, %v303_v6  ;;  %v313_v9 = vsel %vm311_vm0, %v305_v7, 0 }
  0x15   : > { %478 = vmatprep.subr.msk.bf16.mxu0 %vm311_vm0, %v306_v8 }
  0x16   : > { %319 = vmatpush1.bf16.msra.mxu0 %v313_v9 }
  0x19   : > { %479 = vmatmul.mubr.msk.bf16.vlgmr.msra.gmra.mrb[0].mxu0 %vm307_vm1, %v300_v10 }
  0x86   : > { %v366_v12 = vpop.permute.xlu0 %365 }
  0x87   : > { %v368_v15 = vmul.f32 %v366_v12, %v360_v13  ;;  %v369_v16 = vmul.f32 %v366_v12, %v361_v14  ;;  %v382_v17 = vpop.permute.xlu1 %381 }
  0x8a   : > { %v374_v18 = vpop.permute.xlu0 %373 }
  0x8b   : > { %v376_v20 = vadd.f32 %v374_v18, %v368_v15  ;;  %v377_v23 = vadd.f32 %v374_v18, %v369_v16  ;;  %v392_v28 = vpop.permute.xlu1 %391 }
  0xec   : > { %v352_v19 = vpop.f32.mrb[0].mxu0 }
  0xed   : > { %v384_v21 = vmul.f32 %v382_v17, %v352_v19  ;;  %v354_v22 = vpop.f32.mrb[1].mxu0 }
  0xee   : > { %v385_v24 = vmul.f32 %v382_v17, %v354_v22  ;;  %v356_v25 = vpop.f32.mrb[2].mxu0 }
  0xef   : > { %v386_v26 = vadd.f32 %v384_v21, %v376_v20  ;;  %v357_v27 = vpop.f32.mrb[3].mxu0 }
  0xf0   : > { %v387_v29 = vadd.f32 %v385_v24, %v377_v23 }
  0xf1   : > { %v394_v30 = vadd.f32 %v392_v28, %v386_v26 }
  0xf2   : > { %v395_v31 = vadd.f32 %v392_v28, %v387_v29 }
  0xf3   : > { %v396_v32 = vmax.f32 %v394_v30, 0.0 }
  0xf4   : > { %v397_v33 = vmax.f32 %v395_v31, 0.0 }
  0xf5   : > { %398 = vst [vmem:[%s298_s23] sm:$0xff] %v396_v32 }
  0xf6   : > { %399 = vst [vmem:[%s298_s23 + $0x8] sm:$0xff] %v397_v33 }
  0xf7 PF: > { %s17_s24 = sadd.s32 1, %s503_s24  }
  0xf8   : > { %p14_p4 = scmp.ge.s32.totalorder %s17_s24, 4  }
  0xfa   :  { %16 = sbr.rel (!%p14_p4) target bundleno = 1 (0x1), region = 81 }

// kernel: residual_block.3
= control target key start
LH: loop header
LB: loop body
LE: loop exit
PB: predicated region body
PF: predicated region fallthrough
CT: control target
= control target key end

     0   :  { %s546_s12 = smov 0   ;;  %s586_s0 = inlined_call_operand.vmem [shape: f32[2,4,256], index: 0, kind: input, shape index: {}]   ;;  %s587_s1 = inlined_call_operand.vmem [shape: bf16[32,12], index: 1, kind: input, shape index: {}]   ;;  %s588_s2 = inlined_call_operand.vmem [shape: bf16[2,8,256], index: 2, kind: output, shape index: {0}]   ;;  %s589_s3 = inlined_call_operand.vmem [shape: f32[2,8,4], index: 3, kind: output, shape index: {1}]  }
   0x1 LB: > { %s463_s13 = sadd.s32 4294967295, %s519_s12   ;;  %p467_p0 = scmp.ge.s32.totalorder %s519_s12, 1  ;;  %s519_s12 = sphi %s546_s12, %s14_s12  }
   0x2   : > { %p140_p1 = scmp.lt.s32.totalorder %s519_s12, 3 }
   0x4   : > { %p141_p2 = pnand %p467_p0, %p140_p1 }
   0x5   : > { %p168_p3 = scmp.lt.s32.totalorder (!%p141_p2), %s463_s13, 1  ;;  %v521_v3 = vmov (!%p141_p2), 0   ;;  %s522_s18 = smov (!%p141_p2), 16   ;;  %v188_v4 = vlaneseq (!%p141_p2)  ;;  %vm232_vm3 = vcmask (!%p141_p2), 1043456   ;;  %vm254_vm5 = vcmask (!%p141_p2), 1045504   ;;  %v511_v25 = vld [vmem:[%s587_s1] sm:$0xff] (!%p141_p2)  }
   0x6   : > { %144 = sbr.rel (%p141_p2) target bundleno = 643 (0x283), region = 28  ;;  %293 = vmatprep.mubr.bf16.mxu0 (!%p141_p2), %v521_v3  ;;  %303 = vmatprep.mubr.bf16.mxu1 (!%p141_p2), %v521_v3  ;;  %s523_s19 = smov (!%p141_p2), 112   ;;  %v512_v26 = vld [vmem:[%s587_s1 + $0x8] sm:$0xff] (!%p141_p2)   ;;  %vm247_vm6 = vcmask (!%p141_p2), 97280   ;;  %vm369_vm13 = vcmask (!%p141_p2), 7168   ;;  %vm371_vm14 = vcmask (!%p141_p2), 15360  }
   0x7   : > { %v560_v5 = vand.u32 (!%p141_p2), 127, %v188_v4  ;;  %s524_s24 = smov (!%p141_p2), 1   ;;  %s525_s25 = smov (!%p141_p2), 127   ;;  %vm373_vm15 = vcmask (!%p141_p2), 23552  }
   0x9   : > { %vm208_vm0 = vcmp.lt.s32.totalorder (!%p141_p2), %v560_v5, 16  ;;  %v190_v9 = vadd.s32 (!%p141_p2), 128, %v560_v5  ;;  %vm193_vm1 = vcmp.ge.s32.totalorder (!%p141_p2), %v560_v5, 16  ;;  %vm221_vm2 = vcmp.lt.s32.totalorder (!%p141_p2), %v560_v5, 112 }
   0xa   : > { %v191_v39 = vand.u32 (!%p141_p2), 15, %v560_v5  ;;  %vm318_vm7 = vcmp.lt.s32.totalorder (!%p141_p2), %v560_v5, 1  ;;  %vm333_vm10 = vcmp.lt.s32.totalorder (!%p141_p2), %v560_v5, 127 }
   0xb   : > { %vm196_vm4 = vcmp.lt.s32.totalorder (!%p141_p2), %v190_v9, 240  ;;  %v192_v40 = vand.u32 (!%p141_p2), 15, %v190_v9 }
   0xc   : > { %vm197_vm8 = vcmp.ge.s32.totalorder (!%p141_p2), %v191_v39, 1  ;;  %vm199_vm11 = vcmp.le.s32.totalorder (!%p141_p2), %v191_v39, 14 }
   0xd   : > { %s591_s13 = smov (!%p168_p3, %s463_s13), 1  ;;  %vm198_vm9 = vcmp.ge.s32.totalorder %v192_v40, 1  ;;  %vm200_vm12 = vcmp.le.s32.totalorder %v192_v40, 14 }
   0xe   : > { %s554_s14 = sshll.u32 %s591_s13, 3 }
   0xf   : > { %s172_s17 = scalar_lea.vmem %s586_s0, %s554_s14  ;;  %s177_s28 = scalar_lea.vmem %s588_s2, %s554_s14 }
  0x10   : > { %v183_v0 = vld [vmem:[%s172_s17] sm:$0xff]  ;;  %s181_s4 = scalar_lea.vmem %s589_s3, %s554_s14 }
  0x11   : > { %v202_v1 = vcombine.high %v183_v0, %v183_v0  ;;  %v230_v11 = vcombine.low %v183_v0, %v183_v0 }
  0x13   : > { %v499_v2 = vpack.i.bf16 %v202_v1, %v183_v0 }
  0x15   : > { %500 = vrot.lane.b32.xlu0 %v499_v2, %s522_s18 }
  0x19   : > { %505 = vrot.lane.b32.xlu0 %v499_v2, %s523_s19 }
  0x87   : > { %v501_v6 = vpop.permute.xlu0 %500 }
  0x88   : > { %v503_v7 = vunpack.i.h.bf16 %v501_v6  ;;  %v502_v8 = vunpack.i.l.bf16 %v501_v6 }
  0x8a   : > { %v210_v10 = vsel %vm208_vm0, %v503_v7, %v502_v8  ;;  %v209_v16 = vsel %vm208_vm0, %v502_v8, %v503_v7  ;;  %vm375_vm0 = vcmask 31744  }
  0x8b   : > { %v506_v12 = vpop.permute.xlu0 %505  ;;  %v215_v13 = vsel %vm193_vm1, %v210_v10, 0.0  ;;  %v234_v21 = vsel %vm232_vm3, %v209_v16, %v183_v0 }
  0x8c   : > { %v508_v14 = vunpack.i.h.bf16 %v506_v12  ;;  %v507_v15 = vunpack.i.l.bf16 %v506_v12  ;;  %v233_v19 = vsel %vm232_vm3, %v215_v13, %v230_v11 }
  0x8e   : > { %v223_v17 = vsel %vm221_vm2, %v508_v14, %v507_v15  ;;  %v222_v18 = vsel %vm221_vm2, %v507_v15, %v508_v14 }
  0x8f   : > { %v229_v20 = vsel %vm196_vm4, %v223_v17, 0.0  ;;  %v235_v22 = vpack.c.bf16 %v222_v18, %v233_v19 }
  0x90   : > { %v236_v23 = vpack.c.bf16 %v229_v20, %v234_v21 }
  0x91   : > { %v256_v24 = vsel %vm254_vm5, %v235_v22, 0 }
  0x92   : > { %475 = vmatprep.subr.msk.bf16.mxu0 %vm254_vm5, %v236_v23  ;;  %484 = vmatprep.subr.msk.bf16.mxu1 %vm254_vm5, %v236_v23 }
  0x93   : > { %262 = vmatpush1.bf16.msra.mxu0 %v256_v24  ;;  %485 = vmatpush1.bf16.msra.mxu1 %v256_v24 }
  0x96   : > { %476 = vmatmul.mubr.msk.bf16.vlgmr.msra.gmra.mrb[0].mxu0 %vm247_vm6, %v511_v25  ;;  %477 = vmatmul.mubr.msk.bf16.vlgmr.msra.gmra.mrb[0].mxu1 %vm247_vm6, %v512_v26 }
 0x169   : > { %v295_v27 = vpop.f32.mrb[0].mxu0  ;;  %v305_v28 = vpop.f32.mrb[0].mxu1 }
 0x16a   : > { %314 = vrot.lane.b32.xlu1 %v295_v27, %s524_s24  ;;  %v297_v29 = vpop.f32.mrb[1].mxu0  ;;  %v307_v30 = vpop.f32.mrb[1].mxu1  ;;  %329 = vrot.lane.b32.xlu0 %v305_v28, %s525_s25 }
 0x16b   : > { %v299_v31 = vpop.f32.mrb[2].mxu0  ;;  %v309_v32 = vpop.f32.mrb[2].mxu1 }
 0x16c   : > { %v301_v33 = vpop.f32.mrb[3].mxu0  ;;  %v364_v34 = vmul.f32 %v309_v32, %v309_v32  ;;  %v311_v35 = vpop.f32.mrb[3].mxu1 }
 0x16d   : > { %v361_v36 = vadd.f32 %v311_v35, %v309_v32  ;;  %v365_v37 = vmul.f32 %v311_v35, %v311_v35 }
 0x16e   : > { %316 = vrot.lane.b32.xlu1 %v297_v29, %s524_s24 }
 0x16f   : > { %v366_v38 = vadd.f32 %v365_v37, %v364_v34 }
 0x172   : > { %331 = vrot.lane.b32.xlu1 %v307_v30, %s525_s25 }
 0x1dc   : > { %v315_v41 = vpop.permute.xlu1 %314  ;;  %v330_v47 = vpop.permute.xlu0 %329 }
 0x1e0   : > { %v317_v42 = vpop.permute.xlu1 %316 }
 0x1e1   : > { %v319_v43 = vsel %vm318_vm7, %v315_v41, %v317_v42  ;;  %v320_v44 = vsel %vm318_vm7, %v317_v42, %v315_v41 }
 0x1e2   : > { %v325_v45 = vsel %vm197_vm8, %v320_v44, 0.0  ;;  %v326_v46 = vsel %vm198_vm9, %v319_v43, 0.0 }
 0x1e3   : > { %v327_v49 = vadd.f32 %v325_v45, %v299_v31  ;;  %v328_v50 = vadd.f32 %v326_v46, %v301_v33 }
 0x1e4   : > { %v332_v48 = vpop.permute.xlu1 %331 }
 0x1e5   : > { %v334_v51 = vsel %vm333_vm10, %v330_v47, %v332_v48  ;;  %v335_v52 = vsel %vm333_vm10, %v332_v48, %v330_v47 }
 0x1e6   : > { %v340_v53 = vsel %vm199_vm11, %v334_v51, 0.0  ;;  %v341_v54 = vsel %vm200_vm12, %v335_v52, 0.0 }
 0x1e7   : > { %v342_v55 = vadd.f32 %v340_v53, %v327_v49  ;;  %v343_v56 = vadd.f32 %v341_v54, %v328_v50 }
 0x1e9   : > { %v483_v57 = vpack.c.bf16 %v343_v56, %v342_v55  ;;  %v353_v58 = vadd.f32 %v343_v56, %v342_v55  ;;  %v356_v59 = vmul.f32 %v342_v55, %v342_v55  ;;  %v357_v60 = vmul.f32 %v343_v56, %v343_v56 }
 0x1eb   : > { %352 = vst [vmem:[%s177_s28] sm:$0xff] %v483_v57  ;;  %354 = vadd.xlane.f32.xlu0 %v353_v58  ;;  %v358_v61 = vadd.f32 %v357_v60, %v356_v59 }
 0x1ed   : > { %359 = vadd.xlane.f32.xlu1 %v358_v61 }
 0x1ef   : > { %362 = vadd.xlane.f32.xlu0 %v361_v36 }
 0x1f3   : > { %367 = vadd.xlane.f32.xlu0 %v366_v38 }
 0x278   : > { %v355_v62 = vpop.xlane.xlu0 %354 }
 0x27a   : > { %v360_v63 = vpop.xlane.xlu1 %359 }
 0x27b   : > { %v370_v1 = vsel %vm369_vm13, %v355_v62, %v360_v63 }
 0x27c   : > { %v363_v0 = vpop.xlane.xlu0 %362 }
 0x27d   : > { %v372_v2 = vsel %vm371_vm14, %v370_v1, %v363_v0 }
 0x280   : > { %v368_v3 = vpop.xlane.xlu0 %367 }
 0x281   : > { %v374_v4 = vsel %vm373_vm15, %v372_v2, %v368_v3 }
 0x282   : > { %376 = vst.msk [vmem:[%s181_s4] sm:$0xff] %vm375_vm0, %v374_v4 }
 0x283 PF: > { %s14_s12 = sadd.s32 1, %s519_s12  }
 0x284   : > { %p11_p4 = scmp.ge.s32.totalorder %s14_s12, 4  }
 0x286   :  { %13 = sbr.rel (!%p11_p4) target bundleno = 1 (0x1), region = 70 }

// kernel: residual_block.4
= control target key start
LH: loop header
LB: loop body
LE: loop exit
PB: predicated region body
PF: predicated region fallthrough
CT: control target
= control target key end

     0   :  { %s613_s18 = smov 0   ;;  %s663_s0 = inlined_call_operand.vmem [shape: bf16[2,8,256], index: 0, kind: input, shape index: {}]   ;;  %s664_s1 = inlined_call_operand.vmem [shape: f32[8,1], index: 1, kind: input, shape index: {}]   ;;  %s665_s2 = inlined_call_operand.vmem [shape: f32[8,1], index: 2, kind: input, shape index: {}]   ;;  %s666_s3 = inlined_call_operand.vmem [shape: bf16[24,24], index: 3, kind: input, shape index: {}]   ;;  %s667_s4 = inlined_call_operand.vmem [shape: bf16[2,8,256], index: 4, kind: output, shape index: {0}]   ;;  %s668_s5 = inlined_call_operand.vmem [shape: f32[2,8,2], index: 5, kind: output, shape index: {1}]  }
   0x1 LB: > { %s514_s19 = sadd.s32 4294967295, %s575_s18   ;;  %p518_p0 = scmp.ge.s32.totalorder %s575_s18, 1  ;;  %s575_s18 = sphi %s613_s18, %s16_s18  }
   0x2   : > { %p190_p1 = scmp.lt.s32.totalorder %s575_s18, 3 }
   0x4   : > { %p191_p2 = pnand %p518_p0, %p190_p1 }
   0x5   : > { %v240_v0 = vld [vmem:[%s664_s1] sm:$0xff] (!%p191_p2)  ;;  %v577_v1 = vmov (!%p191_p2), 0   ;;  %p222_p3 = scmp.lt.s32.totalorder (!%p191_p2), %s514_s19, 1  ;;  %s578_s28 = smov (!%p191_p2), 16   ;;  %v261_v15 = vlaneseq (!%p191_p2)  ;;  %vm580_vm3 = vmmov (!%p191_p2), 1   ;;  %vm319_vm6 = vcmask (!%p191_p2), 1043456  }
   0x6   : > { %194 = sbr.rel (%p191_p2) target bundleno = 758 (0x2f6), region = 36  ;;  %556 = vset.pattern.permute.xlu0 (!%p191_p2), %v577_v1  ;;  %358 = vmatprep.mubr.bf16.mxu0 (!%p191_p2), %v577_v1  ;;  %v248_v2 = vld [vmem:[%s665_s2] sm:$0xff] (!%p191_p2)  ;;  %s579_s29 = smov (!%p191_p2), 112   ;;  %v568_v35 = vld [vmem:[%s666_s3 + $0x8] ss:$0 sps:$4 sm:$0xff] (!%p191_p2)   ;;  %vm312_vm7 = vcmask (!%p191_p2), 195584  }
   0x7   : > { %243 = vperm.xlu0 (!%p191_p2), %556, %v240_v0   ;;  %368 = vmatprep.mubr.bf16.mxu1 (!%p191_p2), %v577_v1  ;;  %v633_v16 = vand.u32 (!%p191_p2), 127, %v261_v15  ;;  %v567_v34 = vld [vmem:[%s666_s3] sm:$0xff] (!%p191_p2)   ;;  %s581_s9 = smov (!%p191_p2), 1   ;;  %s582_s10 = smov (!%p191_p2), 127   ;;  %vm424_vm14 = vcmask (!%p191_p2), 7168   ;;  %vm426_vm15 = vcmask (!%p191_p2), 15360  }
   0x9   : > { %v636_v18 = vadd.s32 (!%p191_p2), 128, %v633_v16  ;;  %vm278_vm0 = vcmp.lt.s32.totalorder (!%p191_p2), %v633_v16, 16  ;;  %vm266_vm1 = vcmp.ge.s32.totalorder (!%p191_p2), %v633_v16, 16  ;;  %vm291_vm2 = vcmp.lt.s32.totalorder (!%p191_p2), %v633_v16, 112 }
   0xa   : > { %vm526_vm4 = vmpackc.low (!%p191_p2), %vm580_vm3, %vm266_vm1  ;;  %v264_v44 = vand.u32 (!%p191_p2), 15, %v633_v16  ;;  %vm381_vm8 = vcmp.lt.s32.totalorder (!%p191_p2), %v633_v16, 1  ;;  %vm396_vm11 = vcmp.lt.s32.totalorder (!%p191_p2), %v633_v16, 127 }
   0xb   : > { %251 = vperm.xlu0 (!%p191_p2), %556, %v248_v2   ;;  %vm269_vm5 = vcmp.lt.s32.totalorder (!%p191_p2), %v636_v18, 240  ;;  %v265_v45 = vand.u32 (!%p191_p2), 15, %v636_v18 }
   0xc   : > { %vm270_vm9 = vcmp.ge.s32.totalorder (!%p191_p2), %v264_v44, 1  ;;  %vm272_vm12 = vcmp.le.s32.totalorder (!%p191_p2), %v264_v44, 14 }
   0xd   : > { %s670_s19 = smov (!%p222_p3, %s514_s19), 1  ;;  %vm271_vm10 = vcmp.ge.s32.totalorder %v265_v45, 1  ;;  %vm273_vm13 = vcmp.le.s32.totalorder %v265_v45, 14 }
   0xe   : > { %s627_s24 = sshll.u32 %s670_s19, 3 }
   0xf   : > { %s226_s27 = scalar_lea.vmem %s663_s0, %s627_s24  ;;  %s231_s13 = scalar_lea.vmem %s667_s4, %s627_s24 }
  0x10   : > { %v237_v3 = vld [vmem:[%s226_s27] sm:$0xff]  ;;  %s235_s16 = scalar_lea.vmem %s668_s5, %s627_s24 }
  0x11   : > { %v238_v4 = vunpack.c.l.bf16 %v237_v3  ;;  %v239_v5 = vunpack.c.h.bf16 %v237_v3 }
  0x86   : > { %v244_v6 = vpop.permute.xlu0 %243 }
  0x87   : > { %v246_v7 = vmul.f32 %v244_v6, %v238_v4  ;;  %v247_v8 = vmul.f32 %v244_v6, %v239_v5 }
  0x8a   : > { %v252_v9 = vpop.permute.xlu0 %251 }
  0x8b   : > { %v254_v10 = vadd.f32 %v252_v9, %v246_v7  ;;  %v255_v11 = vadd.f32 %v252_v9, %v247_v8 }
  0x8d   : > { %v256_v12 = vmax.f32 %v254_v10, 0.0  ;;  %v257_v13 = vmax.f32 %v255_v11, 0.0 }
  0x8f   : > { %v557_v14 = vpack.i.bf16 %v257_v13, %v256_v12 }
  0x91   : > { %558 = vrot.lane.b32.xlu1 %v557_v14, %s578_s28 }
  0x95   : > { %563 = vrot.lane.b32.xlu1 %v557_v14, %s579_s29 }
 0x103   : > { %v559_v17 = vpop.permute.xlu1 %558 }
 0x104   : > { %v561_v19 = vunpack.i.h.bf16 %v559_v17  ;;  %v560_v20 = vunpack.i.l.bf16 %v559_v17 }
 0x106   : > { %v279_v21 = vsel %vm278_vm0, %v560_v20, %v561_v19  ;;  %v280_v22 = vsel %vm278_vm0, %v561_v19, %v560_v20 }
 0x107   : > { %v564_v23 = vpop.permute.xlu1 %563  ;;  %v301_v24 = vpack.c.bf16 %v257_v13, %v279_v21  ;;  %v527_v25 = vpack.c.bf16 %v256_v12, %v280_v22 }
 0x108   : > { %v566_v26 = vunpack.i.h.bf16 %v564_v23  ;;  %v565_v27 = vunpack.i.l.bf16 %v564_v23 }
 0x109   : > { %326 = vmatprep.subr.bf16.mxu0 %v301_v24  ;;  %538 = vmatprep.subr.bf16.mxu1 %v301_v24 }
 0x10a   : > { %v293_v28 = vsel %vm291_vm2, %v566_v26, %v565_v27  ;;  %528 = vmatpush1.bf16.msk.msra.mxu0 %vm526_vm4, %v527_v25  ;;  %540 = vmatpush1.bf16.msk.msra.mxu1 %vm526_vm4, %v527_v25  ;;  %v292_v29 = vsel %vm291_vm2, %v565_v27, %v566_v26 }
 0x10b   : > { %v299_v30 = vsel %vm269_vm5, %v293_v28, 0.0  ;;  %v302_v31 = vpack.c.bf16 %v292_v29, %v292_v29 }
 0x10c   : > { %v303_v32 = vpack.c.bf16 %v299_v30, %v299_v30 }
 0x10d   : > { %v321_v33 = vsel %vm319_vm6, %v302_v31, 0 }
 0x10e   : > { %529 = vmatprep.subr.msk.bf16.mxu0 %vm319_vm6, %v303_v32  ;;  %539 = vmatprep.subr.msk.bf16.mxu1 %vm319_vm6, %v303_v32 }
 0x10f   : > { %329 = vmatpush1.bf16.msra.mxu0 %v321_v33  ;;  %541 = vmatpush1.bf16.msra.mxu1 %v321_v33 }
 0x112   : > { %530 = vmatmul.mubr.msk.bf16.vlgmr.msra.gmra.mrb[0].mxu0 %vm312_vm7, %v567_v34  ;;  %531 = vmatmul.mubr.msk.bf16.vlgmr.msra.gmra.mrb[0].mxu1 %vm312_vm7, %v568_v35 }
 0x1e5   : > { %v360_v36 = vpop.f32.mrb[0].mxu0  ;;  %v370_v37 = vpop.f32.mrb[0].mxu1 }
 0x1e6   : > { %377 = vrot.lane.b32.xlu0 %v360_v36, %s581_s9  ;;  %v362_v38 = vpop.f32.mrb[1].mxu0  ;;  %v372_v39 = vpop.f32.mrb[1].mxu1 }
 0x1e7   : > { %379 = vrot.lane.b32.xlu1 %v362_v38, %s581_s9  ;;  %v364_v40 = vpop.f32.mrb[2].mxu0  ;;  %v374_v41 = vpop.f32.mrb[2].mxu1 }
 0x1e8   : > { %v366_v42 = vpop.f32.mrb[3].mxu0  ;;  %v375_v43 = vpop.f32.mrb[3].mxu1 }
 0x1ea   : > { %392 = vrot.lane.b32.xlu0 %v370_v37, %s582_s10 }
 0x1eb   : > { %394 = vrot.lane.b32.xlu1 %v372_v39, %s582_s10 }
 0x258   : > { %v378_v46 = vpop.permute.xlu0 %377 }
 0x259   : > { %v380_v47 = vpop.permute.xlu1 %379 }
 0x25a   : > { %v382_v48 = vsel %vm381_vm8, %v378_v46, %v380_v47  ;;  %v383_v49 = vsel %vm381_vm8, %v380_v47, %v378_v46 }
 0x25b   : > { %v388_v50 = vsel %vm270_vm9, %v383_v49, 0.0  ;;  %v389_v51 = vsel %vm271_vm10, %v382_v48, 0.0 }
 0x25c   : > { %v393_v52 = vpop.permute.xlu0 %392  ;;  %v390_v54 = vadd.f32 %v388_v50, %v364_v40  ;;  %v391_v55 = vadd.f32 %v389_v51, %v366_v42 }
 0x25d   : > { %v395_v53 = vpop.permute.xlu1 %394 }
 0x25e   : > { %v397_v56 = vsel %vm396_vm11, %v393_v52, %v395_v53  ;;  %v398_v57 = vsel %vm396_vm11, %v395_v53, %v393_v52 }
 0x25f   : > { %v403_v58 = vsel %vm272_vm12, %v397_v56, 0.0  ;;  %v404_v59 = vsel %vm273_vm13, %v398_v57, 0.0 }
 0x260   : > { %v405_v60 = vadd.f32 %v403_v58, %v390_v54  ;;  %v406_v61 = vadd.f32 %v404_v59, %v391_v55 }
 0x262   : > { %v537_v62 = vpack.c.bf16 %v406_v61, %v405_v60  ;;  %v416_v63 = vadd.f32 %v406_v61, %v405_v60  ;;  %v419_v0 = vmul.f32 %v405_v60, %v405_v60  ;;  %v420_v1 = vmul.f32 %v406_v61, %v406_v61 }
 0x264   : > { %415 = vst [vmem:[%s231_s13] sm:$0xff] %v537_v62  ;;  %417 = vadd.xlane.f32.xlu0 %v416_v63  ;;  %v421_v2 = vadd.f32 %v420_v1, %v419_v0 }
 0x266   : > { %422 = vadd.xlane.f32.xlu1 %v421_v2 }
 0x2f1   : > { %v418_v3 = vpop.xlane.xlu0 %417 }
 0x2f3   : > { %v423_v4 = vpop.xlane.xlu1 %422 }
 0x2f4   : > { %v425_v5 = vsel %vm424_vm14, %v418_v3, %v423_v4 }
 0x2f5   : > { %427 = vst.msk [vmem:[%s235_s16] sm:$0xff] %vm426_vm15, %v425_v5 }
 0x2f6 PF: > { %s16_s18 = sadd.s32 1, %s575_s18  }
 0x2f7   : > { %p13_p4 = scmp.ge.s32.totalorder %s16_s18, 4  }
 0x2f9   :  { %15 = sbr.rel (!%p13_p4) target bundleno = 1 (0x1), region = 78 }

</bundles_post_ra>
